<compile_context>
chip_gen: v7x
topology: tpu7x:2x2x1
jax: 0.10.0
libtpu: 0.0.40
codegen_flags: <defaults>
</compile_context>

<pallas_src>
import jax
import jax.numpy as jnp
from jax import lax
from jax.experimental import pallas as pl
from jax.experimental.pallas import tpu as pltpu


def skills_encoder_forward(skills, desc, work, emb_table, W, work_skill):
    """skills: (B,S) int32 ids; desc: (B,Ld,H) f32; work: (B,Lw,H) f32."""
    B, S = skills.shape
    _, Ld, H = desc.shape
    _, Lw, _ = work.shape
    NV, V = emb_table.shape
    F = V + 2 * H
    F_pad = ((F + 127) // 128) * 128
    BS, BLd, BLw = B * S, B * Ld, B * Lw
    f32, bf16 = jnp.float32, jnp.bfloat16

    # ---------------- wrapper-side layout plumbing (free vs. kernel) --------
    ids = skills.reshape(BS, 1).astype(jnp.int32)

    # Pad the vocab dim to a sublane multiple; padded rows are zero and never
    # selected (ids < NV), so the one-hot matmul result is unchanged.
    NV_pad = ((NV + 7) // 8) * 8
    emb_bf = jnp.zeros((NV_pad, V), bf16).at[:NV, :].set(emb_table.astype(bf16))

    # [W1 | W]: the rel1 slice (added into rel) starts at lane 0.
    w_cat = jnp.concatenate([work_skill[:V, :], W], axis=1).astype(bf16)  # (V, 2H)
    w2 = work_skill[V:, :].astype(bf16)                                   # (H, H)

    desc_f = desc.reshape(BLd, H).astype(bf16)                            # (BLd, H)
    desc_t = desc_f.T                                                     # (H, BLd)
    work_f = work.reshape(BLw, H).astype(bf16)                            # (BLw, H)
    work_t = work_f.T                                                     # (H, BLw)

    def block_bias(rows, cols, rpb, cpb):
        rb = jnp.arange(rows, dtype=jnp.int32)[:, None] // rpb
        cb = jnp.arange(cols, dtype=jnp.int32)[None, :] // cpb
        return jnp.where(rb == cb, 0.0, -1e30).astype(f32)

    bias_att = block_bias(BS, BLd, S, Ld)                                 # (BS, BLd)
    bias_rel = block_bias(BS, BLw, S, Lw)                                 # (BS, BLw)

    # ---------------------------- the kernel --------------------------------
    def kernel(ids_ref, emb_ref, wcat_ref, w2_ref, desc_t_ref, desc_f_ref,
               work_t_ref, work_f_ref, bias_att_ref, bias_rel_ref, out_ref):
        ids_c = ids_ref[...]                                              # (BS, 1) i32

        # -- in-kernel embedding gather: one-hot (VPU) + tiny MXU matmul -----
        onehot = jnp.where(
            ids_c == lax.broadcasted_iota(jnp.int32, (BS, NV_pad), 1),
            1.0, 0.0).astype(bf16)                                        # (BS, NV_pad)
        sk = jnp.dot(onehot, emb_ref[...],
                     preferred_element_type=f32)                          # (BS, V), exact bf16 rows

        # -- fused skill projections: sk @ [W1 | W] --------------------------
        pj = jnp.dot(sk.astype(bf16), wcat_ref[...],
                     preferred_element_type=f32)                          # (BS, 2H)
        rel1 = pj[:, :H]                                                  # sk @ W1
        proj = pj[:, H:]                                                  # sk @ W

        # -- attention over description tokens (flattened, block-diag bias) --
        logits = jnp.dot(proj.astype(bf16), desc_t_ref[...],
                         preferred_element_type=f32) + bias_att_ref[...]  # (BS, BLd)
        logits = logits - jnp.max(logits, axis=-1, keepdims=True)
        p = jnp.exp(logits)
        p = p / jnp.sum(p, axis=-1, keepdims=True)                        # exact softmax
        ctx = jnp.dot(p.astype(bf16), desc_f_ref[...],
                      preferred_element_type=f32)                         # (BS, H) (masked p == 0)

        # -- rel = [sk, ctx] @ work_skill == sk@W1 + ctx@W2 -------------------
        rel = rel1 + jnp.dot(ctx.astype(bf16), w2_ref[...],
                             preferred_element_type=f32)                  # (BS, H)

        # -- relevance vs. work tokens (flattened, block-diag bias) ----------
        rel_ma = jnp.dot(rel.astype(bf16), work_t_ref[...],
                         preferred_element_type=f32) + bias_rel_ref[...]  # (BS, BLw)

        # -- rms: per-skill max over work positions -> softmax over skills ---
        row_max = jnp.max(rel_ma, axis=1, keepdims=True)                  # (BS, 1)
        rm = row_max.reshape(B, S, 1)                                     # sublane-tile split
        rm = rm - jnp.max(rm, axis=1, keepdims=True)
        er = jnp.exp(rm)
        rms = er / jnp.sum(er, axis=1, keepdims=True)                     # (B, S, 1)

        # -- rmw: per-work max over skills -> softmax over work positions ----
        col_max = jnp.max(rel_ma, axis=0, keepdims=True)                  # (1, BLw)
        eye = jnp.where(
            lax.broadcasted_iota(jnp.int32, (BLw, BLw), 0)
            == lax.broadcasted_iota(jnp.int32, (BLw, BLw), 1), 1.0, 0.0)  # (BLw, BLw)
        cm_col = jnp.sum(eye * col_max, axis=1, keepdims=True)            # (BLw, 1) diag extract
        cm = cm_col.reshape(B, Lw, 1)
        cm = cm - jnp.max(cm, axis=1, keepdims=True)
        ew = jnp.exp(cm)
        rmw = ew / jnp.sum(ew, axis=1, keepdims=True)                     # (B, Lw, 1)

        # -- rank-1 weighted sums on the VPU (broadcast-mul + sublane reduce) -
        sk3 = sk.reshape(B, S, V)
        ctx3 = ctx.reshape(B, S, H)
        work3 = work_f_ref[...].astype(f32).reshape(B, Lw, H)
        out_sk = jnp.sum(rms * sk3, axis=1)                               # (B, V)
        out_ctx = jnp.sum(rms * ctx3, axis=1)                             # (B, H)
        out_wk = jnp.sum(rmw * work3, axis=1)                             # (B, H)

        # -- single lane-dense store (F padded to a 128-lane multiple) -------
        pieces = [out_sk, out_ctx, out_wk]
        if F_pad > F:
            pieces.append(jnp.zeros((B, F_pad - F), f32))
        # TODO(synk): emit bf16 here if downstream accepts it (halves writeback).
        out_ref[...] = jnp.concatenate(pieces, axis=-1)

    vmem = pl.BlockSpec(memory_space=pltpu.MemorySpace.VMEM)
    out = pl.pallas_call(
        kernel,
        out_shape=jax.ShapeDtypeStruct((B, F_pad), f32),
        in_specs=[vmem] * 10,
        out_specs=vmem,
    )(ids, emb_bf, w_cat, w2, desc_t, desc_f, work_t, work_f, bias_att, bias_rel)

    # TODO(synk): at large B, add a "parallel" batch grid axis (2 TCs on v7x),
    # move ids to PrefetchScalarGridSpec scalar-prefetch, and size per-step
    # tiles against v7x's 64 MiB VMEM (not v5e/v6e's 128 MiB).
    return out[:, :F]                                                     # (B, V + 2H)


def reference(skills, desc, work, emb_table, W, work_skill, matmul_dtype=jnp.bfloat16):
    """Pure-JAX forward pass of the PyTorch SkillsEncoder module.

    Matmul operands are cast to `matmul_dtype` with float32 accumulation to
    mirror the kernel's MXU dtype policy (perf review: bf16 operands), so the
    kernel/reference comparison isolates kernel correctness rather than
    bf16-vs-f32 input quantization."""
    f32 = jnp.float32
    q = lambda x: x.astype(matmul_dtype)
    sk = emb_table.astype(matmul_dtype)[skills].astype(f32)               # (B,S,V)
    proj = jnp.einsum('bsv,vh->bsh', q(sk), q(W), preferred_element_type=f32)
    att = jax.nn.softmax(
        jnp.einsum('bsh,blh->bsl', q(proj), q(desc), preferred_element_type=f32), axis=2)
    ctx = jnp.einsum('bsl,blh->bsh', q(att), q(desc), preferred_element_type=f32)
    cat = jnp.concatenate([sk, ctx], axis=2)                              # (B,S,V+H)
    rel = jnp.einsum('bsf,fh->bsh', q(cat), q(work_skill), preferred_element_type=f32)
    rel_ma = jnp.einsum('bwh,bsh->bws', q(work), q(rel), preferred_element_type=f32)
    rms = jax.nn.softmax(jnp.max(rel_ma, axis=1), axis=1)                 # (B,S)
    rmw = jax.nn.softmax(jnp.max(rel_ma, axis=2), axis=1)                 # (B,Lw)
    out_v = jnp.einsum('bs,bsf->bf', rms, cat)                            # (B,V+H)
    work_v = jnp.einsum('bw,bwh->bh', rmw, q(work).astype(f32))           # (B,H)
    return jnp.concatenate([out_v, work_v], axis=1)


if __name__ == "__main__":
    # Small, deterministic shapes consistent with the module's forward.
    B, S, Ld, Lw = 2, 8, 8, 8
    V, H = 16, 32            # vec_size, hidden_size
    n_skills = 20            # synthetic skill2id size

    key = jax.random.PRNGKey(0)
    k_emb, k_w, k_ws, k_sk, k_desc, k_work = jax.random.split(key, 6)

    # Deterministic synthetic parameters (no file loads).
    emb_table = jax.random.normal(k_emb, (n_skills + 1, V), jnp.float32)
    W = jax.random.normal(k_w, (V, H), jnp.float32) * (2.0 / (V + H)) ** 0.5
    work_skill = jax.random.normal(k_ws, (V + H, H), jnp.float32) * (2.0 / (V + 2 * H)) ** 0.5

    skills = jax.random.randint(k_sk, (B, S), 0, n_skills + 1, jnp.int32)
    desc = jax.random.normal(k_desc, (B, Ld, H), jnp.float32)
    work = jax.random.normal(k_work, (B, Lw, H), jnp.float32)

    out = skills_encoder_forward(skills, desc, work, emb_table, W, work_skill)
    out = jax.block_until_ready(out)

    ref = reference(skills, desc, work, emb_table, W, work_skill)
    assert out.shape == (B, V + 2 * H), out.shape
    max_err = float(jnp.max(jnp.abs(out - ref)))
    assert jnp.allclose(out, ref, atol=2e-3, rtol=2e-3), max_err

    print("KERNEL_OK")
</pallas_src>

<mosaic_0001>
module attributes {stable_mosaic.version = 11 : i64} {
  func.func @kernel(%arg0: memref<16x1xi32, #tpu.memory_space<vmem>>, %arg1: memref<24x16xbf16, #tpu.memory_space<vmem>>, %arg2: memref<16x64xbf16, #tpu.memory_space<vmem>>, %arg3: memref<32x32xbf16, #tpu.memory_space<vmem>>, %arg4: memref<32x16xbf16, #tpu.memory_space<vmem>>, %arg5: memref<16x32xbf16, #tpu.memory_space<vmem>>, %arg6: memref<32x16xbf16, #tpu.memory_space<vmem>>, %arg7: memref<16x32xbf16, #tpu.memory_space<vmem>>, %arg8: memref<16x16xf32, #tpu.memory_space<vmem>>, %arg9: memref<16x16xf32, #tpu.memory_space<vmem>>, %arg10: memref<2x128xf32, #tpu.memory_space<vmem>>) attributes {dimension_semantics = [], scalar_prefetch = 0 : i64, scratch_operands = 0 : i64, tpu.core_type = #tpu.core_type<tc>} {
    %c0 = arith.constant 0 : index
    %c0_0 = arith.constant 0 : index
    %0 = vector.load %arg0[%c0, %c0_0] : memref<16x1xi32, #tpu.memory_space<vmem>>, vector<16x1xi32>
    %1 = tpu.iota {dimensions = array<i32: 1>} : vector<16x24xi32>
    %2 = vector.broadcast %0 : vector<16x1xi32> to vector<16x24xi32>
    %3 = arith.cmpi eq, %2, %1 : vector<16x24xi32>
    %cst = arith.constant 1.000000e+00 : f32
    %cst_1 = arith.constant 0.000000e+00 : f32
    %4 = vector.broadcast %cst : f32 to vector<16x24xf32>
    %5 = vector.broadcast %cst_1 : f32 to vector<16x24xf32>
    %6 = arith.select %3, %4, %5 : vector<16x24xi1>, vector<16x24xf32>
    %7 = arith.truncf %6 : vector<16x24xf32> to vector<16x24xbf16>
    %c0_2 = arith.constant 0 : index
    %c0_3 = arith.constant 0 : index
    %8 = vector.load %arg1[%c0_2, %c0_3] : memref<24x16xbf16, #tpu.memory_space<vmem>>, vector<24x16xbf16>
    %cst_4 = arith.constant dense<0.000000e+00> : vector<16x16xf32>
    %9 = tpu.matmul %7, %8, %cst_4 {dimension_numbers = #tpu.dot_dimension_numbers<[1], [0], [0], [1], [0, 0, 1, 1], [], []>} : vector<16x24xbf16>, vector<24x16xbf16>, vector<16x16xf32> -> vector<16x16xf32>
    %10 = arith.truncf %9 : vector<16x16xf32> to vector<16x16xbf16>
    %c0_5 = arith.constant 0 : index
    %c0_6 = arith.constant 0 : index
    %11 = vector.load %arg2[%c0_5, %c0_6] : memref<16x64xbf16, #tpu.memory_space<vmem>>, vector<16x64xbf16>
    %cst_7 = arith.constant dense<0.000000e+00> : vector<16x64xf32>
    %12 = tpu.matmul %10, %11, %cst_7 {dimension_numbers = #tpu.dot_dimension_numbers<[1], [0], [0], [1], [0, 0, 1, 1], [], []>} : vector<16x16xbf16>, vector<16x64xbf16>, vector<16x64xf32> -> vector<16x64xf32>
    %13 = vector.extract_strided_slice %12 {offsets = [0, 0], sizes = [16, 32], strides = [1, 1]} : vector<16x64xf32> to vector<16x32xf32>
    %14 = vector.extract_strided_slice %12 {offsets = [0, 32], sizes = [16, 32], strides = [1, 1]} : vector<16x64xf32> to vector<16x32xf32>
    %15 = arith.truncf %14 : vector<16x32xf32> to vector<16x32xbf16>
    %c0_8 = arith.constant 0 : index
    %c0_9 = arith.constant 0 : index
    %16 = vector.load %arg4[%c0_8, %c0_9] : memref<32x16xbf16, #tpu.memory_space<vmem>>, vector<32x16xbf16>
    %cst_10 = arith.constant dense<0.000000e+00> : vector<16x16xf32>
    %17 = tpu.matmul %15, %16, %cst_10 {dimension_numbers = #tpu.dot_dimension_numbers<[1], [0], [0], [1], [0, 0, 1, 1], [], []>} : vector<16x32xbf16>, vector<32x16xbf16>, vector<16x16xf32> -> vector<16x16xf32>
    %c0_11 = arith.constant 0 : index
    %c0_12 = arith.constant 0 : index
    %18 = vector.load %arg8[%c0_11, %c0_12] : memref<16x16xf32, #tpu.memory_space<vmem>>, vector<16x16xf32>
    %19 = arith.addf %17, %18 : vector<16x16xf32>
    %cst_13 = arith.constant dense<0xFF800000> : vector<16xf32>
    %20 = vector.multi_reduction <maximumf>, %19, %cst_13 [1] : vector<16x16xf32> to vector<16xf32>
    %21 = vector.shape_cast %20 : vector<16xf32> to vector<16x1xf32>
    %22 = vector.broadcast %21 : vector<16x1xf32> to vector<16x16xf32>
    %23 = arith.subf %19, %22 : vector<16x16xf32>
    %24 = math.exp %23 : vector<16x16xf32>
    %cst_14 = arith.constant dense<0.000000e+00> : vector<16xf32>
    %25 = vector.multi_reduction <add>, %24, %cst_14 [1] : vector<16x16xf32> to vector<16xf32>
    %26 = vector.shape_cast %25 : vector<16xf32> to vector<16x1xf32>
    %27 = vector.broadcast %26 : vector<16x1xf32> to vector<16x16xf32>
    %28 = arith.divf %24, %27 : vector<16x16xf32>
    %29 = arith.truncf %28 : vector<16x16xf32> to vector<16x16xbf16>
    %c0_15 = arith.constant 0 : index
    %c0_16 = arith.constant 0 : index
    %30 = vector.load %arg5[%c0_15, %c0_16] : memref<16x32xbf16, #tpu.memory_space<vmem>>, vector<16x32xbf16>
    %cst_17 = arith.constant dense<0.000000e+00> : vector<16x32xf32>
    %31 = tpu.matmul %29, %30, %cst_17 {dimension_numbers = #tpu.dot_dimension_numbers<[1], [0], [0], [1], [0, 0, 1, 1], [], []>} : vector<16x16xbf16>, vector<16x32xbf16>, vector<16x32xf32> -> vector<16x32xf32>
    %32 = arith.truncf %31 : vector<16x32xf32> to vector<16x32xbf16>
    %c0_18 = arith.constant 0 : index
    %c0_19 = arith.constant 0 : index
    %33 = vector.load %arg3[%c0_18, %c0_19] : memref<32x32xbf16, #tpu.memory_space<vmem>>, vector<32x32xbf16>
    %cst_20 = arith.constant dense<0.000000e+00> : vector<16x32xf32>
    %34 = tpu.matmul %32, %33, %cst_20 {dimension_numbers = #tpu.dot_dimension_numbers<[1], [0], [0], [1], [0, 0, 1, 1], [], []>} : vector<16x32xbf16>, vector<32x32xbf16>, vector<16x32xf32> -> vector<16x32xf32>
    %35 = arith.addf %13, %34 : vector<16x32xf32>
    %36 = arith.truncf %35 : vector<16x32xf32> to vector<16x32xbf16>
    %c0_21 = arith.constant 0 : index
    %c0_22 = arith.constant 0 : index
    %37 = vector.load %arg6[%c0_21, %c0_22] : memref<32x16xbf16, #tpu.memory_space<vmem>>, vector<32x16xbf16>
    %cst_23 = arith.constant dense<0.000000e+00> : vector<16x16xf32>
    %38 = tpu.matmul %36, %37, %cst_23 {dimension_numbers = #tpu.dot_dimension_numbers<[1], [0], [0], [1], [0, 0, 1, 1], [], []>} : vector<16x32xbf16>, vector<32x16xbf16>, vector<16x16xf32> -> vector<16x16xf32>
    %c0_24 = arith.constant 0 : index
    %c0_25 = arith.constant 0 : index
    %39 = vector.load %arg9[%c0_24, %c0_25] : memref<16x16xf32, #tpu.memory_space<vmem>>, vector<16x16xf32>
    %40 = arith.addf %38, %39 : vector<16x16xf32>
    %cst_26 = arith.constant dense<0xFF800000> : vector<16xf32>
    %41 = vector.multi_reduction <maximumf>, %40, %cst_26 [1] : vector<16x16xf32> to vector<16xf32>
    %42 = vector.shape_cast %41 : vector<16xf32> to vector<16x1xf32>
    %43 = vector.shape_cast %42 : vector<16x1xf32> to vector<2x8x1xf32>
    %cst_27 = arith.constant dense<0xFF800000> : vector<2x1xf32>
    %44 = vector.multi_reduction <maximumf>, %43, %cst_27 [1] : vector<2x8x1xf32> to vector<2x1xf32>
    %45 = vector.shape_cast %44 : vector<2x1xf32> to vector<2x1x1xf32>
    %46 = vector.broadcast %45 : vector<2x1x1xf32> to vector<2x8x1xf32>
    %47 = arith.subf %43, %46 : vector<2x8x1xf32>
    %48 = math.exp %47 : vector<2x8x1xf32>
    %cst_28 = arith.constant dense<0.000000e+00> : vector<2x1xf32>
    %49 = vector.multi_reduction <add>, %48, %cst_28 [1] : vector<2x8x1xf32> to vector<2x1xf32>
    %50 = vector.shape_cast %49 : vector<2x1xf32> to vector<2x1x1xf32>
    %51 = vector.broadcast %50 : vector<2x1x1xf32> to vector<2x8x1xf32>
    %52 = arith.divf %48, %51 : vector<2x8x1xf32>
    %cst_29 = arith.constant dense<0xFF800000> : vector<16xf32>
    %53 = vector.multi_reduction <maximumf>, %40, %cst_29 [0] : vector<16x16xf32> to vector<16xf32>
    %54 = vector.shape_cast %53 : vector<16xf32> to vector<1x16xf32>
    %55 = tpu.iota {dimensions = array<i32: 0>} : vector<16x16xi32>
    %56 = tpu.iota {dimensions = array<i32: 1>} : vector<16x16xi32>
    %57 = arith.cmpi eq, %55, %56 : vector<16x16xi32>
    %cst_30 = arith.constant 1.000000e+00 : f32
    %cst_31 = arith.constant 0.000000e+00 : f32
    %58 = vector.broadcast %cst_30 : f32 to vector<16x16xf32>
    %59 = vector.broadcast %cst_31 : f32 to vector<16x16xf32>
    %60 = arith.select %57, %58, %59 : vector<16x16xi1>, vector<16x16xf32>
    %61 = vector.broadcast %54 : vector<1x16xf32> to vector<16x16xf32>
    %62 = arith.mulf %60, %61 : vector<16x16xf32>
    %cst_32 = arith.constant dense<0.000000e+00> : vector<16xf32>
    %63 = vector.multi_reduction <add>, %62, %cst_32 [1] : vector<16x16xf32> to vector<16xf32>
    %64 = vector.shape_cast %63 : vector<16xf32> to vector<16x1xf32>
    %65 = vector.shape_cast %64 : vector<16x1xf32> to vector<2x8x1xf32>
    %cst_33 = arith.constant dense<0xFF800000> : vector<2x1xf32>
    %66 = vector.multi_reduction <maximumf>, %65, %cst_33 [1] : vector<2x8x1xf32> to vector<2x1xf32>
    %67 = vector.shape_cast %66 : vector<2x1xf32> to vector<2x1x1xf32>
    %68 = vector.broadcast %67 : vector<2x1x1xf32> to vector<2x8x1xf32>
    %69 = arith.subf %65, %68 : vector<2x8x1xf32>
    %70 = math.exp %69 : vector<2x8x1xf32>
    %cst_34 = arith.constant dense<0.000000e+00> : vector<2x1xf32>
    %71 = vector.multi_reduction <add>, %70, %cst_34 [1] : vector<2x8x1xf32> to vector<2x1xf32>
    %72 = vector.shape_cast %71 : vector<2x1xf32> to vector<2x1x1xf32>
    %73 = vector.broadcast %72 : vector<2x1x1xf32> to vector<2x8x1xf32>
    %74 = arith.divf %70, %73 : vector<2x8x1xf32>
    %75 = vector.shape_cast %9 : vector<16x16xf32> to vector<2x8x16xf32>
    %76 = vector.shape_cast %31 : vector<16x32xf32> to vector<2x8x32xf32>
    %c0_35 = arith.constant 0 : index
    %c0_36 = arith.constant 0 : index
    %77 = vector.load %arg7[%c0_35, %c0_36] : memref<16x32xbf16, #tpu.memory_space<vmem>>, vector<16x32xbf16>
    %78 = arith.extf %77 : vector<16x32xbf16> to vector<16x32xf32>
    %79 = vector.shape_cast %78 : vector<16x32xf32> to vector<2x8x32xf32>
    %80 = vector.broadcast %52 : vector<2x8x1xf32> to vector<2x8x16xf32>
    %81 = arith.mulf %80, %75 : vector<2x8x16xf32>
    %cst_37 = arith.constant dense<0.000000e+00> : vector<2x16xf32>
    %82 = vector.multi_reduction <add>, %81, %cst_37 [1] : vector<2x8x16xf32> to vector<2x16xf32>
    %83 = vector.broadcast %52 : vector<2x8x1xf32> to vector<2x8x32xf32>
    %84 = arith.mulf %83, %76 : vector<2x8x32xf32>
    %cst_38 = arith.constant dense<0.000000e+00> : vector<2x32xf32>
    %85 = vector.multi_reduction <add>, %84, %cst_38 [1] : vector<2x8x32xf32> to vector<2x32xf32>
    %86 = vector.broadcast %74 : vector<2x8x1xf32> to vector<2x8x32xf32>
    %87 = arith.mulf %86, %79 : vector<2x8x32xf32>
    %cst_39 = arith.constant dense<0.000000e+00> : vector<2x32xf32>
    %88 = vector.multi_reduction <add>, %87, %cst_39 [1] : vector<2x8x32xf32> to vector<2x32xf32>
    %cst_40 = arith.constant 0.000000e+00 : f32
    %89 = vector.broadcast %cst_40 : f32 to vector<2x48xf32>
    %90 = tpu.concatenate %82, %85, %88, %89 in 1 : vector<2x16xf32>, vector<2x32xf32>, vector<2x32xf32>, vector<2x48xf32> -> vector<2x128xf32>
    %c0_41 = arith.constant 0 : index
    %c0_42 = arith.constant 0 : index
    %91 = vector.load %arg10[%c0_41, %c0_42] : memref<2x128xf32, #tpu.memory_space<vmem>>, vector<2x128xf32>
    tpu.vector_store %arg10[%c0_41, %c0_42], %90 {strides = array<i32>} : memref<2x128xf32, #tpu.memory_space<vmem>>, vector<2x128xf32>,
    return
  }
}

</mosaic_0001>

<bundles_post_ra>
// kernel: tpu_custom_call.1
= control target key start
LH: loop header
LB: loop body
LE: loop exit
PB: predicated region body
PF: predicated region fallthrough
CT: control target
= control target key end

     0   :  { %v766_v1 = vmov 0   ;;  %v767_v2 = vmov 0.0   ;;  %vm68_vm0 = vcmask 1043456   ;;  %vm768_vm1 = vmmov 0   ;;  %s972_s0 = inlined_call_operand.vmem [shape: s32[16,1], index: 0, kind: input, shape index: {}]   ;;  %s973_s1 = inlined_call_operand.vmem [shape: bf16[24,16], index: 1, kind: input, shape index: {}]   ;;  %s974_s2 = inlined_call_operand.vmem [shape: bf16[16,64], index: 2, kind: input, shape index: {}]   ;;  %s975_s3 = inlined_call_operand.vmem [shape: bf16[32,32], index: 3, kind: input, shape index: {}]   ;;  %s976_s4 = inlined_call_operand.vmem [shape: bf16[32,16], index: 4, kind: input, shape index: {}]   ;;  %s977_s5 = inlined_call_operand.vmem [shape: bf16[16,32], index: 5, kind: input, shape index: {}]   ;;  %s978_s6 = inlined_call_operand.vmem [shape: bf16[32,16], index: 6, kind: input, shape index: {}]   ;;  %s979_s7 = inlined_call_operand.vmem [shape: bf16[16,32], index: 7, kind: input, shape index: {}]   ;;  %s980_s8 = inlined_call_operand.vmem [shape: f32[16,16], index: 8, kind: input, shape index: {}]   ;;  %s981_s9 = inlined_call_operand.vmem [shape: f32[16,16], index: 9, kind: input, shape index: {}]   ;;  %s982_s10 = inlined_call_operand.hbm [shape: f32[2,128], index: 10, kind: output, shape index: {}]  }
   0x1   :  { %v37_v0 = vld [vmem:[%s972_s0] sm:$0xff]  ;;  %707 = vset.pattern.permute.xlu0 %v766_v1  ;;  %656 = vmatprep.subr.bf16.mxu0 %v767_v2  ;;  %v38_v4 = vld [vmem:[%s972_s0 + $0x8] sm:$0xff] }
   0x2   :  { %v708_v3 = vld [vmem:[%s973_s1] sm:$0xff]   ;;  %42 = vperm.xlu0 %707, %v37_v0   ;;  %664 = vmatprep.subr.bf16.mxu1 %v767_v2  ;;  %v709_v5 = vld [vmem:[%s973_s1 + $0x8] ss:$0 sps:$4 sm:$0xff]  }
   0x3   :  { %657 = vmatpush3.bf16.msra.mxu0 %v708_v3  ;;  %v70_v6 = vsel %vm68_vm0, %v709_v5, 0  ;;  %660 = vmatprep.mubr.msk.bf16.mxu0 %vm768_vm1, %v767_v2 }
   0x4   :  { %658 = vmatprep.subr.bf16.mxu0 %v767_v2  ;;  %666 = vmatprep.mubr.msk.bf16.mxu1 %vm768_vm1, %v767_v2 }
   0x6   :  { %45 = vperm.xlu0 %707, %v38_v4  }
   0x7   :  { %659 = vmatpush3.bf16.msra.mxu0 %v70_v6 }
   0x8   :  { %678 = vmatprep.subr.bf16.mxu0 %v767_v2 }
   0x9   :  { %15 = vsyncpa [#allocation3], 0  ;;  %v39_v7 = vlaneseq  ;;  %vm64_vm4 = vcmask 195584   ;;  %v710_v14 = vld [vmem:[%s974_s2] sm:$0xff]   ;;  %vm122_vm5 = vcmask 130048   ;;  %v712_v21 = vld [vmem:[%s976_s4 + $0x8] sm:$0xff]  }
   0xa   :  { %665 = vmatpush3.bf16.msra.mxu1 %v710_v14  ;;  %v711_v20 = vld [vmem:[%s976_s4] sm:$0xff]   ;;  %s769_s24 = smov 96   ;;  %vm189_vm6 = vcmask 261120   ;;  %v173_v30 = vld [vmem:[%s980_s8 + $0x8] sm:$0xff]  ;;  %vm585_vm9 = vcmask 1041409   ;;  %s770_s19 = smov 16  }
   0xb   :  { %v849_v8 = vand.u32 127, %v39_v7  ;;  %670 = vmatprep.subr.bf16.mxu1 %v767_v2  ;;  %v172_v28 = vld [vmem:[%s980_s8] sm:$0xff]  ;;  %v715_v57 = vld [vmem:[%s975_s3 + $0x8] sm:$0xff]   ;;  %vm601_vm10 = vcmask 392192   ;;  %s772_s20 = smov [#allocation2]   ;;  %vm603_vm11 = vcmask 654336  }
   0xc   :  { %v713_v48 = vld [vmem:[%s977_s5] sm:$0xff]   ;;  %v717_v0 = vld [vmem:[%s978_s6 + $0x8] sm:$0xff]   ;;  %s612_s0 = sshll.u32 %s772_s20, 4  ;;  %s613_s0 = int_to_ptr.vmem [resolvable:$true] %s612_s0 }
   0xd   :  { %v714_v49 = vld [vmem:[%s975_s3] sm:$0xff]   ;;  %s742_s1 = scalar_lea.vmem %s613_s0, 32  ;;  %p747_p1 = scmp.lt.s32.totalorder %s613_s0, %s613_s0 }
   0xe   :  { %v716_v58 = vld [vmem:[%s978_s6] sm:$0xff]   ;;  %p743_p0 = scmp.ne.s32.totalorder %s613_s0, %s742_s1  ;;  %p748_p2 = scmp.lt.s32.totalorder %s742_s1, %s742_s1 }
  0x10   :  { %p749_p3 = por %p748_p2, %p747_p1 }
  0x12   :  { %p750_p4 = pnand %p749_p3, %p743_p0 }
  0x81   :  { %v43_v9 = vpop.permute.xlu0 %42 }
  0x82   :  { %vm47_vm2 = vcmp.eq.s32.totalorder %v43_v9, %v849_v8 }
  0x83   :  { %v49_v11 = vsel %vm47_vm2, 1.0, %v767_v2 }
  0x85   :  { %v46_v10 = vpop.permute.xlu0 %45 }
  0x86   :  { %vm48_vm3 = vcmp.eq.s32.totalorder %v46_v10, %v849_v8 }
  0x87   :  { %v50_v12 = vsel %vm48_vm3, 1.0, %v767_v2 }
  0x88   :  { %v51_v13 = vpack.c.bf16 %v50_v12, %v49_v11  ;;  %v377_v11 = vld [vmem:[%s981_s9] sm:$0xff] }
  0x8a   :  { %661 = vmatmul.mubr.msk.bf16.vlgmr.msra.gmra.mrb[0].mxu0 %vm64_vm4, %v51_v13  ;;  %v378_v13 = vld [vmem:[%s981_s9 + $0x8] sm:$0xff] }
  0x8b   :  { %680 = vmatprep.mubr.msk.bf16.mxu0 %vm768_vm1, %v767_v2  ;;  %679 = vmatpush3.bf16.msra.mxu0 %v713_v48 }
  0x8c   :  { %692 = vmatprep.subr.bf16.mxu0 %v767_v2 }
 0x15d   :  { %v861_v15 = vpop.f32.mrb[0].mxu0 }
 0x15e   :  { %v662_v16 = vpop.f32.mrb[1].mxu0 }
 0x15f   :  { %v863_v17 = vpop.f32.mrb[2].mxu0 }
 0x160   :  { %v113_v18 = vpack.c.bf16 %v863_v17, %v861_v15  ;;  %v663_v19 = vpop.f32.mrb[3].mxu0 }
 0x162   :  { %667 = vmatmul.mubr.msk.bf16.vlgmr.msra.gmra.mrb[0].mxu1 %vm122_vm5, %v113_v18 }
 0x163   :  { %674 = vmatprep.mubr.msk.bf16.mxu1 %vm768_vm1, %v767_v2  ;;  %671 = vmatpush3.bf16.msra.mxu1 %v711_v20 }
 0x164   :  { %672 = vmatprep.subr.bf16.mxu1 %v767_v2 }
 0x167   :  { %673 = vmatpush3.bf16.msra.mxu1 %v712_v21 }
 0x168   :  { %684 = vmatprep.subr.bf16.mxu1 %v767_v2 }
 0x235   :  { %v878_v22 = vpop.f32.mrb[0].mxu1 }
 0x236   :  { %v668_v23 = vpop.f32.mrb[1].mxu1 }
 0x237   :  { %v880_v24 = vpop.f32.mrb[2].mxu1 }
 0x238   :  { %v669_v25 = vpop.f32.mrb[3].mxu1  ;;  %v167_v26 = vpack.c.bf16 %v880_v24, %v878_v22 }
 0x23a   :  { %175 = vrot.lane.b32.xlu1 %v167_v26, %s769_s24 }
 0x2ac   :  { %v176_v27 = vpop.permute.xlu1 %175 }
 0x2ad   :  { %675 = vmatmul.mubr.msk.bf16.vlgmr.msra.gmra.mrb[4].mxu1 %vm189_vm6, %v176_v27 }
 0x2ae   :  { %688 = vmatprep.mubr.msk.bf16.mxu1 %vm768_vm1, %v767_v2  ;;  %685 = vmatpush3.bf16.msra.mxu1 %v714_v49 }
 0x2af   :  { %686 = vmatprep.subr.bf16.mxu1 %v767_v2 }
 0x2b2   :  { %687 = vmatpush3.bf16.msra.mxu1 %v715_v57 }
 0x380   :  { %v227_v29 = vpop.f32.mrb[4].mxu1 }
 0x381   :  { %v228_v31 = vadd.f32 %v227_v29, %v172_v28  ;;  %v676_v32 = vpop.f32.mrb[5].mxu1 }
 0x382   :  { %v230_v33 = vpop.f32.mrb[6].mxu1 }
 0x383   :  { %v231_v34 = vadd.f32 %v230_v33, %v173_v30  ;;  %v677_v35 = vpop.f32.mrb[7].mxu1  ;;  %v234_v36 = vsel %vm122_vm5, %v228_v31, -inf }
 0x384   :  { %235 = vmax.xlane.f32.xlu1 %v234_v36 }
 0x385   :  { %v237_v37 = vsel %vm122_vm5, %v231_v34, -inf }
 0x386   :  { %238 = vmax.xlane.f32.xlu0 %v237_v37 }
 0x411   :  { %v236_v38 = vpop.xlane.xlu1 %235 }
 0x412   :  { %v240_v39 = vsub.f32 %v228_v31, %v236_v38 }
 0x413   :  { %v239_v40 = vpop.xlane.xlu0 %238 }
 0x414   :  { %v242_v41 = vmul.f32 1.442695, %v240_v39  ;;  %v241_v42 = vsub.f32 %v231_v34, %v239_v40 }
 0x416   :  { %718 = vpow2.f32 %v242_v41  ;;  %v244_v43 = vmul.f32 1.442695, %v241_v42 }
 0x418   :  { %720 = vpow2.f32 %v244_v43 }
 0x420   :  { %v719_v44 = vpop.eup %718 }
 0x421   :  { %v246_v45 = vsel %vm122_vm5, %v719_v44, 0.0 }
 0x422   :  { %v721_v46 = vpop.eup %720  ;;  %247 = vadd.xlane.f32.xlu0 %v246_v45 }
 0x423   :  { %v249_v47 = vsel %vm122_vm5, %v721_v46, 0.0 }
 0x424   :  { %250 = vadd.xlane.f32.xlu1 %v249_v47 }
 0x4af   :  { %v248_v50 = vpop.xlane.xlu0 %247 }
 0x4b0   :  { %722 = vrcp.f32 %v248_v50 }
 0x4b1   :  { %v251_v51 = vpop.xlane.xlu1 %250 }
 0x4b2   :  { %724 = vrcp.f32 %v251_v51 }
 0x4ba   :  { %v723_v52 = vpop.eup %722 }
 0x4bb   :  { %v253_v54 = vmul.f32 %v723_v52, %v719_v44 }
 0x4bc   :  { %v725_v53 = vpop.eup %724 }
 0x4bd   :  { %v255_v55 = vmul.f32 %v725_v53, %v721_v46 }
 0x4bf   :  { %v256_v56 = vpack.c.bf16 %v255_v55, %v253_v54 }
 0x4c1   :  { %681 = vmatmul.mubr.msk.bf16.vlgmr.msra.gmra.mrb[4].mxu0 %vm122_vm5, %v256_v56 }
 0x4c2   :  { %696 = vmatprep.mubr.msk.bf16.mxu0 %vm768_vm1, %v767_v2  ;;  %693 = vmatpush3.bf16.msra.mxu0 %v716_v58 }
 0x4c3   :  { %694 = vmatprep.subr.bf16.mxu0 %v767_v2 }
 0x4c6   :  { %695 = vmatpush3.bf16.msra.mxu0 %v717_v0 }
 0x594   :  { %v915_v59 = vpop.f32.mrb[4].mxu0 }
 0x595   :  { %v682_v60 = vpop.f32.mrb[5].mxu0 }
 0x596   :  { %v917_v61 = vpop.f32.mrb[6].mxu0 }
 0x597   :  { %v309_v62 = vpack.c.bf16 %v917_v61, %v915_v59  ;;  %v683_v63 = vpop.f32.mrb[7].mxu0 }
 0x599   :  { %689 = vmatmul.mubr.msk.bf16.vlgmr.msra.gmra.mrb[8].mxu1 %vm189_vm6, %v309_v62 }
 0x66c   :  { %v363_v1 = vpop.f32.mrb[8].mxu1 }
 0x66d   :  { %v370_v3 = vadd.f32 %v363_v1, %v878_v22  ;;  %v690_v4 = vpop.f32.mrb[9].mxu1 }
 0x66e   :  { %v366_v5 = vpop.f32.mrb[10].mxu1 }
 0x66f   :  { %v371_v6 = vadd.f32 %v366_v5, %v880_v24  ;;  %v691_v9 = vpop.f32.mrb[11].mxu1  ;;  %v483_v24 = vshrl.u32 %v39_v7, 7 }
 0x671   :  { %v372_v10 = vpack.c.bf16 %v371_v6, %v370_v3  ;;  %v484_v27 = vadd.s32 8, %v483_v24  ;;  %vm485_vm8 = vcmp.eq.s32.totalorder %v483_v24, %v849_v8 }
 0x672   :  { %v487_v32 = vsel %vm485_vm8, 1.0, %v767_v2 }
 0x673   :  { %697 = vmatmul.mubr.msk.bf16.vlgmr.msra.gmra.mrb[8].mxu0 %vm189_vm6, %v372_v10  ;;  %vm486_vm7 = vcmp.eq.s32.totalorder %v484_v27, %v849_v8 }
 0x674   :  { %v488_v31 = vsel %vm486_vm7, 1.0, %v767_v2 }
 0x746   :  { %v428_v12 = vpop.f32.mrb[8].mxu0 }
 0x747   :  { %v429_v14 = vadd.f32 %v428_v12, %v377_v11  ;;  %v698_v16 = vpop.f32.mrb[9].mxu0 }
 0x748   :  { %v431_v18 = vpop.f32.mrb[10].mxu0 }
 0x749   :  { %v432_v19 = vadd.f32 %v431_v18, %v378_v13  ;;  %v699_v20 = vpop.f32.mrb[11].mxu0  ;;  %v435_v21 = vsel %vm122_vm5, %v429_v14, -inf }
 0x74a   :  { %436 = vmax.xlane.f32.xlu0 %v435_v21 }
 0x74b   :  { %v438_v22 = vsel %vm122_vm5, %v432_v19, -inf }
 0x74c   :  { %439 = vmax.xlane.f32.xlu1 %v438_v22  ;;  %v475_v23 = vmax.f32 %v435_v21, %v438_v22 }
 0x74e   :  { %v476_v25 = vrot.slane %v475_v23, 4 }
 0x750   :  { %v477_v26 = vmax.f32 %v475_v23, %v476_v25 }
 0x752   :  { %v478_v28 = vrot.slane %v477_v26, 2 }
 0x754   :  { %v479_v29 = vmax.f32 %v477_v26, %v478_v28 }
 0x756   :  { %v480_v30 = vrot.slane %v479_v29, 1 }
 0x758   :  { %v481_v33 = vmax.f32 %v479_v29, %v480_v30 }
 0x75a   :  { %v490_v34 = vmul.f32 %v488_v31, %v481_v33  ;;  %v489_v35 = vmul.f32 %v487_v32, %v481_v33 }
 0x75c   :  { %v494_v36 = vsel %vm122_vm5, %v490_v34, 0.0  ;;  %v491_v7 = vsel %vm122_vm5, %v489_v35, 0.0 }
 0x75d   :  { %495 = vadd.xlane.f32.xlu1 %v494_v36  ;;  %492 = vadd.xlane.f32.xlu0 %v491_v7 }
 0x7d7   :  { %v437_v37 = vpop.xlane.xlu0 %436 }
 0x7d8   :  { %v441_v38 = vrot.slane %v437_v37, 4 }
 0x7d9   :  { %v440_v39 = vpop.xlane.xlu1 %439 }
 0x7da   :  { %v442_v40 = vmax.f32 %v437_v37, %v441_v38  ;;  %v447_v41 = vrot.slane %v440_v39, 4 }
 0x7dc   :  { %v443_v8 = vrot.slane %v442_v40, 2  ;;  %v448_v42 = vmax.f32 %v440_v39, %v447_v41 }
 0x7de   :  { %v444_v43 = vmax.f32 %v442_v40, %v443_v8  ;;  %v449_v44 = vrot.slane %v448_v42, 2 }
 0x7e0   :  { %v445_v45 = vrot.slane %v444_v43, 1  ;;  %v450_v2 = vmax.f32 %v448_v42, %v449_v44 }
 0x7e2   :  { %v446_v46 = vmax.f32 %v444_v43, %v445_v45  ;;  %v451_v47 = vrot.slane %v450_v2, 1 }
 0x7e4   :  { %v453_v48 = vsub.f32 %v437_v37, %v446_v46  ;;  %v452_v49 = vmax.f32 %v450_v2, %v451_v47 }
 0x7e6   :  { %v455_v50 = vmul.f32 1.442695, %v453_v48  ;;  %v454_v51 = vsub.f32 %v440_v39, %v452_v49 }
 0x7e8   :  { %726 = vpow2.f32 %v455_v50  ;;  %v457_v52 = vmul.f32 1.442695, %v454_v51 }
 0x7ea   :  { %728 = vpow2.f32 %v457_v52  ;;  %v496_v53 = vpop.xlane.xlu1 %495  ;;  %v493_v54 = vpop.xlane.xlu0 %492 }
 0x7eb   :  { %v503_v55 = vrot.slane %v496_v53, 4  ;;  %v497_v56 = vrot.slane %v493_v54, 4 }
 0x7ed   :  { %v504_v57 = vmax.f32 %v496_v53, %v503_v55  ;;  %v498_v58 = vmax.f32 %v493_v54, %v497_v56 }
 0x7ef   :  { %v505_v60 = vrot.slane %v504_v57, 2  ;;  %v499_v62 = vrot.slane %v498_v58, 2 }
 0x7f1   :  { %v506_v63 = vmax.f32 %v504_v57, %v505_v60  ;;  %v500_v0 = vmax.f32 %v498_v58, %v499_v62 }
 0x7f2   :  { %v727_v1 = vpop.eup %726 }
 0x7f3   :  { %v459_v3 = vrot.slane %v727_v1, 4  ;;  %v507_v4 = vrot.slane %v506_v63, 1  ;;  %v501_v5 = vrot.slane %v500_v0, 1 }
 0x7f4   :  { %v729_v6 = vpop.eup %728 }
 0x7f5   :  { %v460_v9 = vadd.f32 %v727_v1, %v459_v3  ;;  %v465_v10 = vrot.slane %v729_v6, 4  ;;  %v508_v11 = vmax.f32 %v506_v63, %v507_v4  ;;  %v502_v12 = vmax.f32 %v500_v0, %v501_v5 }
 0x7f7   :  { %v466_v13 = vadd.f32 %v729_v6, %v465_v10  ;;  %v510_v14 = vsub.f32 %v496_v53, %v508_v11  ;;  %v509_v16 = vsub.f32 %v493_v54, %v502_v12  ;;  %v461_v18 = vrot.slane %v460_v9, 2 }
 0x7f9   :  { %v513_v19 = vmul.f32 1.442695, %v510_v14  ;;  %v511_v20 = vmul.f32 1.442695, %v509_v16  ;;  %v462_v21 = vadd.f32 %v461_v18, %v460_v9  ;;  %v467_v22 = vrot.slane %v466_v13, 2 }
 0x7fb   :  { %730 = vpow2.f32 %v513_v19  ;;  %v463_v23 = vrot.slane %v462_v21, 1  ;;  %v468_v24 = vadd.f32 %v467_v22, %v466_v13 }
 0x7fc   :  { %732 = vpow2.f32 %v511_v20 }
 0x7fd   :  { %v464_v25 = vadd.f32 %v463_v23, %v462_v21  ;;  %v469_v26 = vrot.slane %v468_v24, 1 }
 0x7ff   :  { %v470_v27 = vadd.f32 %v469_v26, %v468_v24  ;;  %734 = vrcp.f32 %v464_v25 }
 0x801   :  { %736 = vrcp.f32 %v470_v27 }
 0x805   :  { %v731_v28 = vpop.eup %730 }
 0x806   :  { %v733_v29 = vpop.eup %732  ;;  %v521_v30 = vrot.slane %v731_v28, 4 }
 0x807   :  { %v515_v31 = vrot.slane %v733_v29, 4 }
 0x808   :  { %v522_v32 = vadd.f32 %v731_v28, %v521_v30 }
 0x809   :  { %v735_v33 = vpop.eup %734  ;;  %v516_v34 = vadd.f32 %v733_v29, %v515_v31 }
 0x80a   :  { %v472_v35 = vmul.f32 %v735_v33, %v727_v1  ;;  %v523_v36 = vrot.slane %v522_v32, 2  ;;  %v637_v1 = vld [vmem:[%s979_s7] sm:$0xff]   ;;  %s771_s7 = smov 48  }
 0x80b   :  { %v737_v7 = vpop.eup %736  ;;  %v517_v37 = vrot.slane %v516_v34, 2  ;;  %v639_v9 = vunpack.c.h.bf16 %v637_v1  ;;  %v638_v16 = vunpack.c.l.bf16 %v637_v1 }
 0x80c   :  { %v474_v38 = vmul.f32 %v737_v7, %v729_v6  ;;  %v551_v39 = vmul.f32 %v472_v35, %v915_v59  ;;  %v524_v40 = vadd.f32 %v523_v36, %v522_v32  ;;  %v535_v41 = vmul.f32 %v472_v35, %v861_v15 }
 0x80d   :  { %v518_v8 = vadd.f32 %v517_v37, %v516_v34 }
 0x80e   :  { %v552_v42 = vmul.f32 %v474_v38, %v917_v61  ;;  %v553_v43 = vsel %vm189_vm6, %v551_v39, 0.0  ;;  %v525_v44 = vrot.slane %v524_v40, 1  ;;  %v536_v45 = vmul.f32 %v474_v38, %v863_v17 }
 0x80f   :  { %v554_v2 = vrot.slane %v553_v43, 4  ;;  %v519_v46 = vrot.slane %v518_v8, 1  ;;  %v537_v47 = vsel %vm122_vm5, %v535_v41, 0.0 }
 0x810   :  { %v560_v48 = vsel %vm189_vm6, %v552_v42, 0.0  ;;  %v526_v49 = vadd.f32 %v525_v44, %v524_v40  ;;  %v538_v50 = vrot.slane %v537_v47, 4  ;;  %v544_v59 = vsel %vm122_vm5, %v536_v45, 0.0 }
 0x811   :  { %v555_v51 = vadd.f32 %v554_v2, %v553_v43  ;;  %v561_v15 = vrot.slane %v560_v48, 4  ;;  %v520_v52 = vadd.f32 %v519_v46, %v518_v8  ;;  %v545_v53 = vrot.slane %v544_v59, 4 }
 0x812   :  { %738 = vrcp.f32 %v526_v49  ;;  %v539_v61 = vadd.f32 %v538_v50, %v537_v47 }
 0x813   :  { %v556_v54 = vrot.slane %v555_v51, 2  ;;  %v562_v55 = vadd.f32 %v561_v15, %v560_v48  ;;  %740 = vrcp.f32 %v520_v52  ;;  %v546_v17 = vadd.f32 %v545_v53, %v544_v59 }
 0x814   :  { %v540_v56 = vrot.slane %v539_v61, 2 }
 0x815   :  { %v557_v57 = vadd.f32 %v556_v54, %v555_v51  ;;  %v563_v58 = vrot.slane %v562_v55, 2  ;;  %v547_v60 = vrot.slane %v546_v17, 2 }
 0x816   :  { %v541_v62 = vadd.f32 %v540_v56, %v539_v61 }
 0x817   :  { %v558_v63 = vrot.slane %v557_v57, 1  ;;  %v564_v0 = vadd.f32 %v563_v58, %v562_v55  ;;  %v548_v3 = vadd.f32 %v547_v60, %v546_v17 }
 0x818   :  { %v542_v4 = vrot.slane %v541_v62, 1 }
 0x819   :  { %v565_v5 = vrot.slane %v564_v0, 1  ;;  %v549_v6 = vrot.slane %v548_v3, 1  ;;  %v559_v10 = vadd.f32 %v558_v63, %v557_v57 }
 0x81a   :  { %v543_v12 = vadd.f32 %v542_v4, %v541_v62 }
 0x81b   :  { %v566_v11 = vadd.f32 %v565_v5, %v564_v0  ;;  %v550_v13 = vadd.f32 %v549_v6, %v548_v3 }
 0x81c   :  { %v739_v14 = vpop.eup %738 }
 0x81d   :  { %v741_v18 = vpop.eup %740  ;;  %v590_v19 = vsel %vm585_vm9, %v566_v11, %v559_v10  ;;  %v530_v20 = vmul.f32 %v739_v14, %v731_v28  ;;  %v586_v21 = vsel %vm585_vm9, %v550_v13, %v543_v12 }
 0x81e   :  { %591 = vrot.lane.b32.xlu0 %v590_v19, %s770_s19  ;;  %v528_v22 = vmul.f32 %v741_v18, %v733_v29 }
 0x81f   :  { %v568_v23 = vmul.f32 %v639_v9, %v530_v20 }
 0x820   :  { %v567_v24 = vmul.f32 %v638_v16, %v528_v22 }
 0x821   :  { %v576_v25 = vsel %vm189_vm6, %v568_v23, 0.0 }
 0x822   :  { %v569_v26 = vsel %vm189_vm6, %v567_v24, 0.0  ;;  %v577_v27 = vrot.slane %v576_v25, 4 }
 0x823   :  { %v570_v30 = vrot.slane %v569_v26, 4 }
 0x824   :  { %v578_v31 = vadd.f32 %v577_v27, %v576_v25 }
 0x825   :  { %v571_v32 = vadd.f32 %v570_v30, %v569_v26 }
 0x826   :  { %v579_v33 = vrot.slane %v578_v31, 2 }
 0x827   :  { %v572_v34 = vrot.slane %v571_v32, 2 }
 0x828   :  { %v580_v35 = vadd.f32 %v579_v33, %v578_v31 }
 0x829   :  { %v573_v36 = vadd.f32 %v572_v34, %v571_v32 }
 0x82a   :  { %v581_v28 = vrot.slane %v580_v35, 1 }
 0x82b   :  { %v574_v7 = vrot.slane %v573_v36, 1 }
 0x82c   :  { %v582_v37 = vadd.f32 %v581_v28, %v580_v35 }
 0x82d   :  { %v575_v38 = vadd.f32 %v574_v7, %v573_v36 }
 0x82f   :  { %v596_v29 = vsel %vm585_vm9, %v582_v37, %v575_v38 }
 0x830   :  { %597 = vrot.lane.b32.xlu1 %v596_v29, %s771_s7 }
 0x890   :  { %v592_v39 = vpop.permute.xlu0 %591 }
 0x891   :  { %v600_v40 = vsel %vm122_vm5, %v586_v21, %v592_v39 }
 0x8a2   :  { %v598_v41 = vpop.permute.xlu1 %597 }
 0x8a3   :  { %v602_v8 = vsel %vm601_vm10, %v600_v40, %v598_v41 }
 0x8a4   :  { %v604_v42 = vsel %vm603_vm11, %v602_v8, 0.0 }
 0x8a5   :  { %605 = vst [vmem:[#allocation2] sm:$0x3] %v604_v42 }
 0x8a6   :  { %753 = shalt.err (!%p750_p4)
}
 0x8a7   :  { %s754_s22 = scalar_lea.hbm %s982_s10, 32 }
 0x8a8   :  { %p755_p5 = scmp.ne.s32.totalorder %s982_s10, %s754_s22  ;;  %p758_p6 = scmp.lt.u32.totalorder %s754_s22, %s982_s10 }
 0x8aa   :  { %p760_p7 = pnand %p758_p6, %p755_p5 }
 0x8ac   :  { %763 = shalt.err (!%p760_p7)
}
 0x8ad   :  { %615 = dma.vmem_to_hbm [thread:$0]  %s613_s0, 32, %s982_s10, [#allocation3]  }
 0x8ae   :  { %764 = dma.done.wait [#allocation3], 32  }
 0x8af   :  { %765 = vsyncadd [#allocation3], 4294967264 }
 0x8b0   :  { %619 = vsyncpa [#allocation3], 1 }

</bundles_post_ra>
